<compile_context>
chip_gen: v5e
topology: v5e:2x2
jax: 0.10.0
libtpu: 0.0.40
codegen_flags: <defaults>
</compile_context>

<pallas_src>
import jax
import jax.numpy as jnp
from jax import lax
from jax.experimental import pallas as pl
from jax.experimental.pallas import tpu as pltpu


def dqn_kernel(x_ref, w1_ref, b1_ref, w2_ref, b2_ref, w3_ref, b3_ref, o_ref):
    """Fused 3-layer MLP for one batch tile.

    x_ref : (TB, F)   f32  natural-layout batch tile (no transpose anywhere)
    w1    : (F,  H1)  bf16    b1: (1, H1) f32
    w2    : (H2, H1)  bf16    b2: (H2, 1) f32
    w3    : (H2, 1)   f32     b3: (1, 1)  f32
    o_ref : (1,  TB)  f32  lane-dense Q-values for this batch tile
    """
    # Layer 1: canonical MXU matmul, bf16 operands, f32 accumulation.
    xb = x_ref[...].astype(jnp.bfloat16)                                  # (TB, F)
    h1 = jnp.dot(xb, w1_ref[...], preferred_element_type=jnp.float32)
    h1 = jnp.maximum(h1 + b1_ref[...], 0.0).astype(jnp.bfloat16)          # (TB, H1)

    # Layer 2, output-transposed: contract the last dim of both operands
    # (flash-attention dot(q, k.T) pattern).  Result is (H2, TB): hidden on
    # sublanes, batch on lanes.
    h2t = lax.dot_general(
        w2_ref[...], h1,
        dimension_numbers=(((1,), (1,)), ((), ())),
        preferred_element_type=jnp.float32,
    ) + b2_ref[...]                                                        # (H2, TB)
    h2t = jnp.maximum(h2t, 0.0)

    # Layer 3 has a single output unit: elementwise multiply + sublane reduction on
    # the VPU/XLU instead of a degenerate K=H2, N=1 MXU matmul.  Already lane-dense.
    q = jnp.sum(w3_ref[...] * h2t, axis=0, keepdims=True) + b3_ref[...]    # (1, TB)
    o_ref[...] = q


def _round_up(x, m):
    return ((x + m - 1) // m) * m


def dqn_forward(x, params, *, tb=8192):
    """x: (batch, state_dim + action_dim) float32. Returns (batch, 1) float32.

    params are in PyTorch nn.Linear layout: (w1 (H1,F), b1 (H1,), w2 (H2,H1),
    b2 (H2,), w3 (1,H2), b3 (1,)).
    """
    w1, b1, w2, b2, w3, b3 = params
    batch, feat = x.shape
    h1_dim = w1.shape[0]
    h2_dim = w2.shape[0]

    # One-time tiny weight prep (a few KB; negligible vs. streaming x):
    # bf16 MXU operands, f32 biases, layouts matching the kernel above.
    w1t = w1.T.astype(jnp.bfloat16)          # (F, H1)
    b1r = b1.reshape(1, h1_dim)              # (1, H1)
    w2b = w2.astype(jnp.bfloat16)            # (H2, H1) — used via transposed-RHS dot
    b2c = b2.reshape(h2_dim, 1)              # (H2, 1)
    w3c = w3.reshape(h2_dim, 1)              # (H2, 1)
    b3c = b3.reshape(1, 1)                   # (1, 1)

    # Batch tiling: biggest tile the batch allows (amortizes per-step overhead),
    # but >=2 tiles once the batch is large so a v7x megacore can split the grid.
    tb = max(128, (int(tb) // 128) * 128)
    if batch <= max(256, tb // 4):
        tile_b = batch                                        # single whole-batch block
    else:
        tile_b = min(tb, _round_up(pl.cdiv(batch, 2), 128))   # lane-aligned, >=2 tiles
    grid = (pl.cdiv(batch, tile_b),)         # ragged tail handled by Pallas edge blocks

    resident = lambda a: pl.BlockSpec(a.shape, lambda i: (0, 0))
    in_specs = [
        pl.BlockSpec((tile_b, feat), lambda i: (i, 0)),        # natural-layout x tile
        resident(w1t), resident(b1r),
        resident(w2b), resident(b2c),
        resident(w3c), resident(b3c),
    ]
    out_specs = pl.BlockSpec((1, tile_b), lambda i: (0, i))    # lane-dense Q row

    # Advisory cost hint so XLA schedules around this near-zero-cost call.
    flops = 2 * batch * (feat * h1_dim + h1_dim * h2_dim + h2_dim)
    flops += batch * (h1_dim + h2_dim)                         # relu / bias
    param_bytes = sum(int(p.size) * p.dtype.itemsize for p in params)
    cost = pl.CostEstimate(
        flops=int(flops),
        transcendentals=0,
        bytes_accessed=int(x.size) * x.dtype.itemsize + param_bytes + batch * 4,
    )

    qt = pl.pallas_call(
        dqn_kernel,
        out_shape=jax.ShapeDtypeStruct((1, batch), jnp.float32),
        grid=grid,
        in_specs=in_specs,
        out_specs=out_specs,
        compiler_params=pltpu.CompilerParams(
            dimension_semantics=("parallel",),                 # batch tiles across TCs
            vmem_limit_bytes=48 * 1024 * 1024,                 # large tiles fit on v5e too
        ),
        cost_estimate=cost,
    )(x, w1t, b1r, w2b, b2c, w3c, b3c)
    # Note (v7x): a deeper x pipeline (pipeline_mode=pl.Buffered(3)) or tb=16384 keeps
    # the 3.2 TB/s HBM roofline hidden behind compute; defaults already fit VMEM.

    return qt.reshape(batch, 1)


def init_params(key, state_dim, action_dim):
    """Deterministic synthetic parameters in PyTorch nn.Linear layout."""
    ks = jax.random.split(key, 6)

    def u(k, shape, fan_in):
        bound = 1.0 / jnp.sqrt(fan_in)
        return jax.random.uniform(k, shape, jnp.float32, -bound, bound)

    in1, out1 = state_dim + action_dim, state_dim
    in2, out2 = state_dim, action_dim
    in3, out3 = action_dim, 1
    w1 = u(ks[0], (out1, in1), in1)
    b1 = u(ks[1], (out1,), in1)
    w2 = u(ks[2], (out2, in2), in2)
    b2 = u(ks[3], (out2,), in2)
    w3 = u(ks[4], (out3, in3), in3)
    b3 = u(ks[5], (out3,), in3)
    return (w1, b1, w2, b2, w3, b3)


def reference(x, params):
    """Pure-JAX f32 reference with the same math as the torch forward."""
    w1, b1, w2, b2, w3, b3 = params
    h1 = jnp.maximum(x @ w1.T + b1, 0.0)
    h2 = jnp.maximum(h1 @ w2.T + b2, 0.0)
    return h2 @ w3.T + b3


if __name__ == "__main__":
    state_dim = 32
    action_dim = 8

    key = jax.random.PRNGKey(0)
    k_params, k_x1, k_x2 = jax.random.split(key, 3)
    params = init_params(k_params, state_dim, action_dim)

    # bf16 MXU operands (f32 accumulate) => ~1e-2-level relative error on the 40/32-term
    # dot products; compare against the f32 reference with a correspondingly loose tol.
    ATOL = RTOL = 5e-2

    # Tiled path: 3 batch tiles including a ragged (44-row) edge block, no padding.
    x_big = jax.random.normal(k_x1, (300, state_dim + action_dim), jnp.float32)
    out_big = jax.block_until_ready(dqn_forward(x_big, params, tb=128))
    assert out_big.shape == (300, 1)
    assert jnp.allclose(out_big, reference(x_big, params), atol=ATOL, rtol=RTOL)

    # Whole-array path: tiny, non-aligned batch handled as a single block.
    x_small = jax.random.normal(k_x2, (4, state_dim + action_dim), jnp.float32)
    out_small = jax.block_until_ready(dqn_forward(x_small, params))
    assert out_small.shape == (4, 1)
    assert jnp.allclose(out_small, reference(x_small, params), atol=ATOL, rtol=RTOL)

    print("KERNEL_OK")
</pallas_src>

<mosaic_0001>
module attributes {stable_mosaic.version = 11 : i64} {
  func.func @dqn_kernel(%arg0: i32, %arg1: memref<128x40xf32, #tpu.memory_space<vmem>>, %arg2: memref<40x32xbf16, #tpu.memory_space<vmem>>, %arg3: memref<1x32xf32, #tpu.memory_space<vmem>>, %arg4: memref<8x32xbf16, #tpu.memory_space<vmem>>, %arg5: memref<8x1xf32, #tpu.memory_space<vmem>>, %arg6: memref<8x1xf32, #tpu.memory_space<vmem>>, %arg7: memref<1x1xf32, #tpu.memory_space<vmem>>, %arg8: memref<1x128xf32, #tpu.memory_space<vmem>>) attributes {dimension_semantics = [#tpu.dimension_semantics<parallel>], iteration_bounds = array<i64: 3>, scalar_prefetch = 0 : i64, scratch_operands = 0 : i64, tpu.core_type = #tpu.core_type<tc>, window_params = [{transform_indices = @transform_0, window_bounds = array<i64: 128, 40>}, {pipeline_mode = #tpu.pipeline_mode<synchronous>, transform_indices = @transform_1, window_bounds = array<i64: 40, 32>}, {pipeline_mode = #tpu.pipeline_mode<synchronous>, transform_indices = @transform_2, window_bounds = array<i64: 1, 32>}, {pipeline_mode = #tpu.pipeline_mode<synchronous>, transform_indices = @transform_3, window_bounds = array<i64: 8, 32>}, {pipeline_mode = #tpu.pipeline_mode<synchronous>, transform_indices = @transform_4, window_bounds = array<i64: 8, 1>}, {pipeline_mode = #tpu.pipeline_mode<synchronous>, transform_indices = @transform_5, window_bounds = array<i64: 8, 1>}, {pipeline_mode = #tpu.pipeline_mode<synchronous>, transform_indices = @transform_6, window_bounds = array<i64: 1, 1>}, {transform_indices = @transform_7, window_bounds = array<i64: 1, 128>}]} {
    %c0 = arith.constant 0 : index
    %c0_0 = arith.constant 0 : index
    %0 = vector.load %arg1[%c0, %c0_0] : memref<128x40xf32, #tpu.memory_space<vmem>>, vector<128x40xf32>
    %1 = arith.truncf %0 : vector<128x40xf32> to vector<128x40xbf16>
    %c0_1 = arith.constant 0 : index
    %c0_2 = arith.constant 0 : index
    %2 = vector.load %arg2[%c0_1, %c0_2] : memref<40x32xbf16, #tpu.memory_space<vmem>>, vector<40x32xbf16>
    %cst = arith.constant dense<0.000000e+00> : vector<128x32xf32>
    %3 = tpu.matmul %1, %2, %cst {dimension_numbers = #tpu.dot_dimension_numbers<[1], [0], [0], [1], [0, 0, 1, 1], [], []>} : vector<128x40xbf16>, vector<40x32xbf16>, vector<128x32xf32> -> vector<128x32xf32>
    %c0_3 = arith.constant 0 : index
    %c0_4 = arith.constant 0 : index
    %4 = vector.load %arg3[%c0_3, %c0_4] : memref<1x32xf32, #tpu.memory_space<vmem>>, vector<1x32xf32>
    %5 = vector.broadcast %4 : vector<1x32xf32> to vector<128x32xf32>
    %6 = arith.addf %3, %5 : vector<128x32xf32>
    %cst_5 = arith.constant 0.000000e+00 : f32
    %7 = vector.broadcast %cst_5 : f32 to vector<128x32xf32>
    %8 = arith.maximumf %6, %7 : vector<128x32xf32>
    %9 = arith.truncf %8 : vector<128x32xf32> to vector<128x32xbf16>
    %c0_6 = arith.constant 0 : index
    %c0_7 = arith.constant 0 : index
    %10 = vector.load %arg4[%c0_6, %c0_7] : memref<8x32xbf16, #tpu.memory_space<vmem>>, vector<8x32xbf16>
    %cst_8 = arith.constant dense<0.000000e+00> : vector<8x128xf32>
    %11 = tpu.matmul %10, %9, %cst_8 {dimension_numbers = #tpu.dot_dimension_numbers<[1], [1], [0], [0], [0, 0, 1, 0], [], []>} : vector<8x32xbf16>, vector<128x32xbf16>, vector<8x128xf32> -> vector<8x128xf32>
    %c0_9 = arith.constant 0 : index
    %c0_10 = arith.constant 0 : index
    %12 = vector.load %arg5[%c0_9, %c0_10] : memref<8x1xf32, #tpu.memory_space<vmem>>, vector<8x1xf32>
    %13 = vector.broadcast %12 : vector<8x1xf32> to vector<8x128xf32>
    %14 = arith.addf %11, %13 : vector<8x128xf32>
    %cst_11 = arith.constant 0.000000e+00 : f32
    %15 = vector.broadcast %cst_11 : f32 to vector<8x128xf32>
    %16 = arith.maximumf %14, %15 : vector<8x128xf32>
    %c0_12 = arith.constant 0 : index
    %c0_13 = arith.constant 0 : index
    %17 = vector.load %arg6[%c0_12, %c0_13] : memref<8x1xf32, #tpu.memory_space<vmem>>, vector<8x1xf32>
    %18 = vector.broadcast %17 : vector<8x1xf32> to vector<8x128xf32>
    %19 = arith.mulf %18, %16 : vector<8x128xf32>
    %cst_14 = arith.constant dense<0.000000e+00> : vector<128xf32>
    %20 = vector.multi_reduction <add>, %19, %cst_14 [0] : vector<8x128xf32> to vector<128xf32>
    %21 = vector.shape_cast %20 : vector<128xf32> to vector<1x128xf32>
    %c0_15 = arith.constant 0 : index
    %c0_16 = arith.constant 0 : index
    %22 = vector.load %arg7[%c0_15, %c0_16] : memref<1x1xf32, #tpu.memory_space<vmem>>, vector<1x1xf32>
    %23 = vector.broadcast %22 : vector<1x1xf32> to vector<1x128xf32>
    %24 = arith.addf %21, %23 : vector<1x128xf32>
    %c0_17 = arith.constant 0 : index
    %c0_18 = arith.constant 0 : index
    %25 = vector.load %arg8[%c0_17, %c0_18] : memref<1x128xf32, #tpu.memory_space<vmem>>, vector<1x128xf32>
    tpu.vector_store %arg8[%c0_17, %c0_18], %24 {strides = array<i32>} : memref<1x128xf32, #tpu.memory_space<vmem>>, vector<1x128xf32>,
    return
  }
  func.func @transform_0(%arg0: i32) -> (i32, i32) {
    %c0_i32 = arith.constant 0 : i32
    %c0_i32_0 = arith.constant 0 : i32
    return %arg0, %c0_i32 : i32, i32
  }
  func.func @transform_1(%arg0: i32) -> (i32, i32) {
    %c0_i32 = arith.constant 0 : i32
    %c0_i32_0 = arith.constant 0 : i32
    %c0_i32_1 = arith.constant 0 : i32
    return %c0_i32, %c0_i32_0 : i32, i32
  }
  func.func @transform_2(%arg0: i32) -> (i32, i32) {
    %c0_i32 = arith.constant 0 : i32
    %c0_i32_0 = arith.constant 0 : i32
    %c0_i32_1 = arith.constant 0 : i32
    return %c0_i32, %c0_i32_0 : i32, i32
  }
  func.func @transform_3(%arg0: i32) -> (i32, i32) {
    %c0_i32 = arith.constant 0 : i32
    %c0_i32_0 = arith.constant 0 : i32
    %c0_i32_1 = arith.constant 0 : i32
    return %c0_i32, %c0_i32_0 : i32, i32
  }
  func.func @transform_4(%arg0: i32) -> (i32, i32) {
    %c0_i32 = arith.constant 0 : i32
    %c0_i32_0 = arith.constant 0 : i32
    %c0_i32_1 = arith.constant 0 : i32
    return %c0_i32, %c0_i32_0 : i32, i32
  }
  func.func @transform_5(%arg0: i32) -> (i32, i32) {
    %c0_i32 = arith.constant 0 : i32
    %c0_i32_0 = arith.constant 0 : i32
    %c0_i32_1 = arith.constant 0 : i32
    return %c0_i32, %c0_i32_0 : i32, i32
  }
  func.func @transform_6(%arg0: i32) -> (i32, i32) {
    %c0_i32 = arith.constant 0 : i32
    %c0_i32_0 = arith.constant 0 : i32
    %c0_i32_1 = arith.constant 0 : i32
    return %c0_i32, %c0_i32_0 : i32, i32
  }
  func.func @transform_7(%arg0: i32) -> (i32, i32) {
    %c0_i32 = arith.constant 0 : i32
    %c0_i32_0 = arith.constant 0 : i32
    return %c0_i32, %arg0 : i32, i32
  }
}

</mosaic_0001>

<bundles_post_ra>
// kernel: tpu_custom_call.1
= control target key start
LH: loop header
LB: loop body
LE: loop exit
PB: predicated region body
PF: predicated region fallthrough
CT: control target
= control target key end

     0   :  { %s932_s0 = inlined_call_operand.vmem [shape: f32[300,40], index: 0, kind: input, shape index: {}]   ;;  %s933_s1 = inlined_call_operand.vmem [shape: bf16[40,32], index: 1, kind: input, shape index: {}]   ;;  %s934_s2 = inlined_call_operand.vmem [shape: f32[1,32], index: 2, kind: input, shape index: {}]   ;;  %s935_s3 = inlined_call_operand.vmem [shape: bf16[8,32], index: 3, kind: input, shape index: {}]   ;;  %s936_s4 = inlined_call_operand.vmem [shape: f32[8,1], index: 4, kind: input, shape index: {}]   ;;  %s937_s5 = inlined_call_operand.vmem [shape: f32[8,1], index: 5, kind: input, shape index: {}]   ;;  %s938_s6 = inlined_call_operand.<no memory space> [shape: f32[1,1], index: 6, kind: input, shape index: {}]   ;;  %s939_s7 = inlined_call_operand.hbm [shape: f32[1,300], index: 7, kind: output, shape index: {}]  }
   0x1   :  { %v12_v0 = vstv %s938_s6 }
   0x2   :  { %13 = vst [vmem:[#allocation2] sm:$0x1] %v12_v0 }
   0x3   :  { %14 = vsyncpa [#allocation4], 0 }
   0x4   :  { %16 = vsyncpa [#allocation4 + $0x1], 0  ;;  %s774_s26 = smov 0   ;;  %s776_s27 = smov 0  }
   0x5   :  { %s778_s28 = smov 0   ;;  %s780_s29 = smov 0  }
   0x6 LB: > { %s795_s6 = sadd.s32 4294967295, %s728_s29   ;;  %s590_s30 = sadd.s32 4294967294, %s728_s29   ;;  %s728_s29 = sphi %s780_s29, %s945_s29   ;;  %s724_s28 = sphi %s778_s28, %s944_s28   ;;  %s720_s27 = sphi %s776_s27, %s943_s27   ;;  %s716_s26 = sphi %s774_s26, %s942_s26  }
   0x7   : > { %s799_s8 = sadd.s32 1, %s728_s29   ;;  %s181_s9 = sadd.s32 1, %s724_s28 }
   0x8   : > { %s178_s10 = ssub.s32 %s728_s29, %s799_s8  ;;  %p191_p0 = scmp.ne.s32.totalorder %s724_s28, %s720_s27 }
   0x9   : > { %p179_p1 = scmp.eq.s32.totalorder %s178_s10, 0  ;;  %p192_p2 = scmp.eq.s32.totalorder %s795_s6, 2 }
   0xa   : > { %p197_p3 = scmp.ne.s32.totalorder %s720_s27, %s716_s26  ;;  %p198_p4 = scmp.eq.s32.totalorder %s590_s30, 2 }
   0xb   : > { %s810_s11 = scalar_select %p179_p1, %s724_s28, %s181_s9  }
   0xc   : > { %p812_p5 = por %p192_p2, %p191_p0  ;;  %p816_p6 = por %p198_p4, %p197_p3 }
   0xd   : > { %p593_p7 = scmp.ge.s32.totalorder %s728_s29, 1  ;;  %p251_p8 = scmp.lt.s32.totalorder %s728_s29, 4 }
   0xf   : > { %p252_p9 = pnand %p593_p7, %p251_p8 }
  0x10   : > { %s594_s16 = sshll.u32 (!%p252_p9), %s795_s6, 4  ;;  %s284_s18 = sand.u32 (!%p252_p9), 1, %s720_s27  }
  0x11   : > { %255 = sbr.rel (%p252_p9) target bundleno = 446 (0x1be), region = 48  ;;  %p291_p10 = scmp.lt.s32.totalorder (!%p252_p9), %s594_s16, 37 }
  0x12   : > { %s531_s21 = scalar_lea.hbm (!%p252_p9), %s939_s7, %s795_s6  ;;  %s523_s25 = scalar_lea.sflag (!%p252_p9), [#allocation4], %s284_s18 }
  0x13   : > { %s535_s24 = sshll.u32 (!%p252_p9), %s531_s21, 4  ;;  %s686_s14 = scalar_lea.hbm (!%p252_p9), %s939_s7, 3  ;;  %s536_s24 = int_to_ptr.hbm [resolvable:$true] %s535_s24 }
  0x14   : > { %s680_s30 = sshra.s32 (!%p252_p9), %s536_s24, 4  ;;  %s681_s30 = int_to_ptr.hbm [resolvable:$true] %s680_s30 }
  0x15   : > { %s682_s9 = scalar_lea.hbm (!%p252_p9), %s681_s30, 1  ;;  %p687_p0 = scmp.lt.s32.totalorder (!%p252_p9), %s681_s30, %s939_s7 }
  0x16   : > { %v329_v1 = vld [vmem:[%s933_s1 + $0x10] sm:$0xf]  ;;  %vm374_vm0 = vcmask 1043456   ;;  %s947_s16 = smov (!%p291_p10, %s594_s16), 37  ;;  %v616_v5 = vld [vmem:[%s933_s1 + $0x8] sm:$0xff]  ;;  %v615_v6 = vld [vmem:[%s933_s1] sm:$0xff]  ;;  %p683_p11 = scmp.ne.s32.totalorder %s681_s30, %s682_s9 }
  0x17   : > { %v343_v2 = vunpack.c.l.b16 %v329_v1  ;;  %s595_s17 = sshll.u32 %s947_s16, 3  ;;  %vm349_vm1 = vcmask 326656   ;;  %v864_v32 = vld [vmem:[%s934_s2] ss:$0 sm:$0xff]  ;;  %vm458_vm2 = vcmask 261120   ;;  %p688_p1 = scmp.lt.s32.totalorder %s686_s14, %s682_s9 }
  0x18   : > { %s832_s22 = scalar_lea.vmem %s932_s0, %s595_s17  ;;  %p684_p12 = pnand %p683_p11, %p812_p5 }
  0x19   : > { %v346_v3 = vpack.c.b16 %v343_v2, %v343_v2  ;;  %v309_v7 = vld [vmem:[%s832_s22 + $0x40] sm:$0xff]  ;;  %v310_v8 = vld [vmem:[%s832_s22 + $0x48] sm:$0xff]  ;;  %v311_v10 = vld [vmem:[%s832_s22 + $0x50] sm:$0xff]  ;;  %p689_p2 = por %p688_p1, %p687_p0 }
  0x1a   : > { %v321_v9 = vpack.c.bf16 %v310_v8, %v309_v7  ;;  %v312_v11 = vld [vmem:[%s832_s22 + $0x58] sm:$0xff]  ;;  %v301_v13 = vld [vmem:[%s832_s22] sm:$0xff]  ;;  %v302_v14 = vld [vmem:[%s832_s22 + $0x8] sm:$0xff]  ;;  %p685_p13 = pneg %p684_p12 }
  0x1b   : > { %v376_v4 = vsel %vm374_vm0, %v346_v3, 0  ;;  %v322_v12 = vpack.c.bf16 %v312_v11, %v311_v10  ;;  %v317_v15 = vpack.c.bf16 %v302_v14, %v301_v13  ;;  %v307_v16 = vld [vmem:[%s832_s22 + $0x30] sm:$0xff]  ;;  %v308_v17 = vld [vmem:[%s832_s22 + $0x38] sm:$0xff]  ;;  %v313_v19 = vld [vmem:[%s832_s22 + $0x60] sm:$0xff]  ;;  %v730_v13 = vmov 0  }
  0x1c   : > { %618 = vmatpush.bf16.msra.mxu3 %v376_v4  ;;  %383 = vmatpush.bf16.msra.mxu0 %v376_v4  ;;  %v320_v18 = vpack.c.bf16 %v308_v17, %v307_v16  ;;  %v314_v20 = vld [vmem:[%s832_s22 + $0x68] sm:$0xff]  ;;  %v303_v22 = vld [vmem:[%s832_s22 + $0x10] sm:$0xff]  ;;  %v304_v23 = vld [vmem:[%s832_s22 + $0x18] sm:$0xff]  ;;  %p690_p3 = pnand %p689_p2, %p685_p13 }
  0x1d   : > { %617 = vmatpush.bf16.msra.mxu2 %v376_v4  ;;  %v323_v21 = vpack.c.bf16 %v314_v20, %v313_v19  ;;  %v318_v24 = vpack.c.bf16 %v304_v23, %v303_v22  ;;  %v315_v25 = vld [vmem:[%s832_s22 + $0x70] sm:$0xff]  ;;  %v316_v26 = vld [vmem:[%s832_s22 + $0x78] sm:$0xff]  ;;  %v305_v28 = vld [vmem:[%s832_s22 + $0x20] sm:$0xff]  ;;  %663 = vset.pattern.permute.xlu0 %v730_v13 }
  0x1e   : > { %v324_v27 = vpack.c.bf16 %v316_v26, %v315_v25  ;;  %v306_v29 = vld [vmem:[%s832_s22 + $0x28] sm:$0xff]  ;;  %664 = vset.pattern.permute.xlu1 %v730_v13  ;;  %v500_v20 = vld [vmem:[%s937_s5] sm:$0xff]  ;;  %s285_s22 = scalar_lea.vmem [#allocation3], %s284_s18 }
  0x1f   : > { %v319_v30 = vpack.c.bf16 %v306_v29, %v305_v28  ;;  %s533_s23 = sshll.u32 %s285_s22, 4  ;;  %s534_s23 = int_to_ptr.vmem [resolvable:$true] %s533_s23 }
  0x20   : > { %620 = vmatpush.bf16.msra.mxu3 %v616_v5  ;;  %384 = vmatpush.bf16.msra.mxu0 %v616_v5 }
  0x21   : > { %619 = vmatpush.bf16.msra.mxu2 %v616_v5 }
  0x24   : > { %622 = vmatpush.bf16.msra.mxu3 %v615_v6  ;;  %385 = vmatpush.bf16.msra.mxu0 %v615_v6 }
  0x25   : > { %621 = vmatpush.bf16.msra.mxu2 %v615_v6 }
  0x27   : > { %608 = vmatmul.msk.bf16.vlgmr.msra.gmra.mxu3 %vm349_vm1, %v321_v9  ;;  %604 = vmatmul.msk.bf16.vlgmr.msra.gmra.mxu0 %vm349_vm1, %v317_v15 }
  0x28   : > { %607 = vmatmul.msk.bf16.vlgmr.msra.gmra.mxu2 %vm349_vm1, %v320_v18 }
  0x37   : > { %609 = vmatmul.msk.bf16.gmra.mxu3 %vm349_vm1, %v322_v12  ;;  %605 = vmatmul.msk.bf16.gmra.mxu0 %vm349_vm1, %v318_v24  ;;  %v452_v12 = vld [vmem:[%s936_s4] sm:$0xff] }
  0x38   : > { %455 = vperm.xlu0 %663, %v452_v12  }
  0x40   : > { %503 = vperm.xlu0 %663, %v500_v20  }
  0x47   : > { %610 = vmatmul.msk.bf16.gmra.mxu3 %vm349_vm1, %v323_v21  ;;  %606 = vmatmul.msk.bf16.gmra.mxu0 %vm349_vm1, %v319_v30  ;;  %v513_v21 = vld [vmem:[#allocation2] sm:$0x1] }
  0x48   : > { %516 = vperm.xlu1 %664, %v513_v21  }
  0x57   : > { %611 = vmatmul.msk.bf16.gmra.mxu3 %vm349_vm1, %v324_v27 }
  0xa4   : > { %v387_v42 = vpop.f32.mrf.mxu0 }
  0xa5   : > { %v388_v28 = vadd.f32 %v864_v32, %v387_v42 }
  0xaa   : > { %v407_v31 = vpop.f32.mrf.mxu3 }
  0xab   : > { %v408_v33 = vadd.f32 %v864_v32, %v407_v31  ;;  %v402_v62 = vpop.f32.mrf.mxu2  ;;  %v427_v31 = vmax.f32 %v388_v28, 0.0 }
  0xac   : > { %v389_v45 = vpop.f32.mrf.mxu0  ;;  %v403_v6 = vadd.f32 %v864_v32, %v402_v62 }
  0xad   : > { %v435_v36 = vmax.f32 %v408_v33, 0.0  ;;  %v390_v29 = vadd.f32 %v864_v32, %v389_v45 }
  0xae   : > { %v433_v8 = vmax.f32 %v403_v6, 0.0 }
  0xaf   : > { %v428_v33 = vmax.f32 %v390_v29, 0.0 }
  0xb2   : > { %v409_v34 = vpop.f32.mrf.mxu3 }
  0xb3   : > { %v410_v35 = vadd.f32 %v864_v32, %v409_v34  ;;  %v404_v5 = vpop.f32.mrf.mxu2 }
  0xb4   : > { %v392_v49 = vpop.f32.mrf.mxu0  ;;  %v405_v7 = vadd.f32 %v864_v32, %v404_v5 }
  0xb5   : > { %v436_v37 = vmax.f32 %v410_v35, 0.0  ;;  %v393_v22 = vadd.f32 %v864_v32, %v392_v49  ;;  %v443_v35 = vpack.c.bf16 %v428_v33, %v427_v31 }
  0xb6   : > { %v434_v9 = vmax.f32 %v405_v7, 0.0 }
  0xb7   : > { %v447_v38 = vpack.c.bf16 %v436_v37, %v435_v36  ;;  %v429_v25 = vmax.f32 %v393_v22, 0.0  ;;  %v463_v36 = vsel %vm458_vm2, %v443_v35, 0  ;;  %v451_v37 = vld [vmem:[%s935_s3] sm:$0xf] }
  0xb8   : > { %v446_v16 = vpack.c.bf16 %v434_v9, %v433_v8 }
  0xb9   : > { %v475_v10 = vsel %vm458_vm2, %v447_v38, 0  ;;  %v456_v38 = vpop.permute.xlu0 %455 }
  0xba   : > { %v412_v39 = vpop.f32.mrf.mxu3  ;;  %v472_v19 = vsel %vm458_vm2, %v446_v16, 0 }
  0xbb   : > { %v413_v61 = vadd.f32 %v864_v32, %v412_v39 }
  0xbc   : > { %v394_v60 = vpop.f32.mrf.mxu0 }
  0xbd   : > { %v437_v1 = vmax.f32 %v413_v61, 0.0  ;;  %v395_v23 = vadd.f32 %v864_v32, %v394_v60 }
  0xbf   : > { %v430_v26 = vmax.f32 %v395_v23, 0.0 }
  0xc1   : > { %v444_v30 = vpack.c.bf16 %v430_v26, %v429_v25 }
  0xc2   : > { %v414_v40 = vpop.f32.mrf.mxu3 }
  0xc3   : > { %v415_v58 = vadd.f32 %v864_v32, %v414_v40  ;;  %v466_v34 = vsel %vm458_vm2, %v444_v30, 0 }
  0xc4   : > { %v397_v3 = vpop.f32.mrf.mxu0 }
  0xc5   : > { %v438_v63 = vmax.f32 %v415_v58, 0.0  ;;  %v398_v14 = vadd.f32 %v864_v32, %v397_v3 }
  0xc7   : > { %v448_v2 = vpack.c.bf16 %v438_v63, %v437_v1  ;;  %v431_v17 = vmax.f32 %v398_v14, 0.0 }
  0xc9   : > { %v478_v4 = vsel %vm458_vm2, %v448_v2, 0 }
  0xca   : > { %v417_v41 = vpop.f32.mrf.mxu3 }
  0xcb   : > { %v418_v53 = vadd.f32 %v864_v32, %v417_v41  ;;  %v504_v41 = vpop.permute.xlu0 %503 }
  0xcc   : > { %v399_v11 = vpop.f32.mrf.mxu0 }
  0xcd   : > { %v439_v57 = vmax.f32 %v418_v53, 0.0  ;;  %v400_v15 = vadd.f32 %v864_v32, %v399_v11 }
  0xcf   : > { %v432_v18 = vmax.f32 %v400_v15, 0.0 }
  0xd1   : > { %v445_v24 = vpack.c.bf16 %v432_v18, %v431_v17 }
  0xd2   : > { %v419_v43 = vpop.f32.mrf.mxu3 }
  0xd3   : > { %v420_v50 = vadd.f32 %v864_v32, %v419_v43  ;;  %v469_v27 = vsel %vm458_vm2, %v445_v24, 0 }
  0xd5   : > { %v440_v55 = vmax.f32 %v420_v50, 0.0 }
  0xd7   : > { %v449_v59 = vpack.c.bf16 %v440_v55, %v439_v57 }
  0xd9   : > { %v481_v0 = vsel %vm458_vm2, %v449_v59, 0 }
  0xda   : > { %v422_v44 = vpop.f32.mrf.mxu3 }
  0xdb   : > { %v423_v46 = vadd.f32 %v864_v32, %v422_v44 }
  0xdd   : > { %v441_v51 = vmax.f32 %v423_v46, 0.0 }
  0xe2   : > { %v424_v47 = vpop.f32.mrf.mxu3 }
  0xe3   : > { %v425_v48 = vadd.f32 %v864_v32, %v424_v47  ;;  %v517_v47 = vpop.permute.xlu1 %516 }
  0xe4   : > { %v519_v50 = vperm.slane %v517_v47, 0 }
  0xe5   : > { %v442_v52 = vmax.f32 %v425_v48, 0.0 }
  0xe7   : > { %v450_v54 = vpack.c.bf16 %v442_v52, %v441_v51 }
  0xe9   : > { %v484_v56 = vsel %vm458_vm2, %v450_v54, 0 }
  0xea   : > { %486 = vmatpush.bf16.xpose.msra.mxu1 %v484_v56 }
  0xf2   : > { %487 = vmatpush.bf16.xpose.msra.mxu1 %v481_v0 }
  0xfa   : > { %488 = vmatpush.bf16.xpose.msra.mxu1 %v478_v4 }
 0x102   : > { %489 = vmatpush.bf16.xpose.msra.mxu1 %v475_v10 }
 0x10a   : > { %490 = vmatpush.bf16.xpose.msra.mxu1 %v472_v19 }
 0x112   : > { %491 = vmatpush.bf16.xpose.msra.mxu1 %v469_v27 }
 0x11a   : > { %492 = vmatpush.bf16.xpose.msra.mxu1 %v466_v34 }
 0x122   : > { %493 = vmatpush.bf16.xpose.msra.mxu1 %v463_v36 }
 0x129   : > { %612 = vmatmul.msk.bf16.vlgmr.msra.gmra.mxu1 %vm458_vm2, %v451_v37 }
 0x1a6   : > { %v495_v32 = vpop.f32.mrf.mxu1 }
 0x1a7   : > { %v496_v39 = vadd.f32 %v495_v32, %v456_v38 }
 0x1a9   : > { %v499_v40 = vmax.f32 %v496_v39, 0.0 }
 0x1ab   : > { %v506_v42 = vmul.f32 %v504_v41, %v499_v40 }
 0x1ad   : > { %v507_v43 = vrot.slane %v506_v42, 4 }
 0x1ae   : > { %v497_v44 = vpop.f32.mrf.mxu1 }
 0x1af   : > { %v508_v45 = vadd.f32 %v507_v43, %v506_v42 }
 0x1b1   : > { %v509_v46 = vrot.slane %v508_v45, 2 }
 0x1b3   : > { %v510_v48 = vadd.f32 %v509_v46, %v508_v45 }
 0x1b5   : > { %v511_v49 = vrot.slane %v510_v48, 1 }
 0x1b7   : > { %v512_v51 = vadd.f32 %v511_v49, %v510_v48 }
 0x1b9   : > { %v520_v52 = vadd.f32 %v519_v50, %v512_v51 }
 0x1bb   : > { %521 = vst [vmem:[%s285_s22] sm:$0x1] %v520_v52 }
 0x1bc   : > { %693 = shalt.err (!%p690_p3)
}
 0x1bd   : > { %623 = dma.vmem_to_hbm [thread:$0]  (%p812_p5), %s534_s23, 16, %s536_s24, %s523_s25  }
 0x1be PF: > { %p629_p4 = scmp.ge.s32.totalorder %s728_s29, 2  ;;  %s547_s17 = sand.u32 1, %s716_s26  }
 0x1bf   : > { %s548_s18 = scalar_lea.sflag [#allocation4], %s547_s17 }
 0x1c0   : > { %p626_p7 = pnand %p629_p4, %p816_p6 }
 0x1c2   : > { %p627_p8 = pneg %p626_p7 }
 0x1c4   : > { %711 = dma.done.wait (%p627_p8), %s548_s18, 16  }
 0x1c5   : > { %713 = vsyncadd (%p627_p8), %s548_s18, 4294967280  ;;  %p19_p9 = scmp.ge.s32.totalorder %s799_s8, 5   ;;  %s942_s26 = smov %s720_s27 }
 0x1c6   : > { %s943_s27 = smov %s724_s28  ;;  %s944_s28 = smov %s810_s11 }
 0x1c7   : > { %s945_s29 = smov %s799_s8  ;;  %21 = sbr.rel (!%p19_p9) target bundleno = 6 (0x6), region = 83 }
 0x1cc   :  { %553 = vsyncpa [#allocation4], 1 }
 0x1cd   :  { %555 = vsyncpa [#allocation4 + $0x1], 1 }

</bundles_post_ra>
